<compile_context>
chip_gen: v7x
topology: tpu7x:2x2x1
jax: 0.10.0
libtpu: 0.0.40
codegen_flags: <defaults>
</compile_context>

<pallas_src>
import functools

import numpy as np
import jax
import jax.numpy as jnp
from jax import lax
from jax.experimental import pallas as pl
from jax.experimental.pallas import tpu as pltpu

NSLOPE = 0.01   # LeakyReLU negative slope (module default)
_H1PAD = 8      # zero columns appended to the h1 scratch so conv2 tap slabs stay in bounds


def _leaky(x):
    return jnp.where(x > 0, x, NSLOPE * x)


def _round_up(x, m):
    return (x + m - 1) // m * m


# ----------------------------------------------------------------------------
# Fused Pallas kernel (channels on sublanes, flattened spatial on lanes):
#   conv1 = 3x3 valid conv over [skip ++ folded-up] channels, + LeakyReLU -> VMEM
#   conv2 = 3x3 valid conv + LeakyReLU                                    -> output
# Each conv = one im2col (9 lane-shifted tap slabs stacked along K) + ONE matmul.
# Full-width trick: a 3x3 tap (dy,dx) of the flattened (C, H*W) image is the slab
# x[:, dy*W+dx : dy*W+dx + Ho*W]; columns >= Wo of each output row are wrap-around
# garbage, discarded by a cheap wrapper-side slice.  Validity invariant: conv2's
# valid columns (x2 <= W-5) only ever read conv1's valid columns (x1 <= W-3).
# ----------------------------------------------------------------------------
def _fused_double_conv_kernel(x_ref, w1t_ref, b1_ref, w2t_ref, b2_ref, o_ref,
                              col1_ref, h1_ref, col2_ref,
                              *, H, W, Cin, Cin_pad, Cout_pad):
    # x_ref   : (1, Cin, (H+1)*W)     concatenated branches, NCHW-flat, 1 zero pad row
    # w1t_ref : (Cout, 9*Cin_pad)     taps stacked along K, each tap zero-padded to Cin_pad
    # b1_ref  : (Cout, 1)             w2t_ref: (Cout, 9*Cout_pad)   b2_ref: (Cout, 1)
    # o_ref   : (1, Cout, Ho2*W)      full-width conv2 output (NCHW-flat)
    # col1_ref: (9*Cin_pad, Ho1*W)    im2col scratch for conv1
    # h1_ref  : (Cout, Ho1*W+_H1PAD)  conv1 activation scratch
    # col2_ref: (9*Cout_pad, Ho2*W)   im2col scratch for conv2
    Cout = o_ref.shape[1]
    Ho1, Ho2 = H - 2, H - 4
    M1, M2 = Ho1 * W, Ho2 * W

    # Zero once so the per-tap padding rows (matched by exactly-zero weights) can
    # never inject NaNs from uninitialized VMEM.
    col1_ref[...] = jnp.zeros_like(col1_ref)
    col2_ref[...] = jnp.zeros_like(col2_ref)

    # ---- conv1: im2col + one matmul + bias + LeakyReLU ----
    for dy in range(3):
        for dx in range(3):
            k = dy * 3 + dx
            off = dy * W + dx
            col1_ref[k * Cin_pad:k * Cin_pad + Cin, :] = x_ref[0, :, off:off + M1]
    acc1 = jnp.dot(w1t_ref[...], col1_ref[...], preferred_element_type=jnp.float32)
    h1_ref[:, 0:M1] = _leaky(acc1 + b1_ref[...])
    h1_ref[:, M1:M1 + _H1PAD] = jnp.zeros((Cout, _H1PAD), jnp.float32)

    # ---- conv2: im2col + one matmul + bias + LeakyReLU ----
    for dy in range(3):
        for dx in range(3):
            k = dy * 3 + dx
            off = dy * W + dx
            col2_ref[k * Cout_pad:k * Cout_pad + Cout, :] = h1_ref[:, off:off + M2]
    acc2 = jnp.dot(w2t_ref[...], col2_ref[...], preferred_element_type=jnp.float32)
    o_ref[0] = _leaky(acc2 + b2_ref[...]).astype(o_ref.dtype)


def fused_double_conv(x_cat_flat, w1t, b1, w2t, b2, *, H, W, Cout):
    """x_cat_flat: (N, Cin, (H+1)*W) NCHW-flat; returns (N, Cout, (H-4)*W) full-width."""
    N, Cin, HWp = x_cat_flat.shape
    Cin_pad = w1t.shape[1] // 9
    Cout_pad = w2t.shape[1] // 9
    Ho1, Ho2 = H - 2, H - 4
    M1, M2 = Ho1 * W, Ho2 * W

    flops = 2 * N * (M1 * 9 * Cin_pad * Cout + M2 * 9 * Cout_pad * Cout)
    bytes_accessed = 4 * (N * Cin * HWp + N * Cout * M2
                          + Cout * 9 * (Cin_pad + Cout_pad) + 2 * Cout)

    # Weight/bias specs have constant index maps -> Pallas keeps them resident.
    out_flat = pl.pallas_call(
        functools.partial(_fused_double_conv_kernel, H=H, W=W, Cin=Cin,
                          Cin_pad=Cin_pad, Cout_pad=Cout_pad),
        out_shape=jax.ShapeDtypeStruct((N, Cout, M2), jnp.float32),
        grid_spec=pltpu.PrefetchScalarGridSpec(
            num_scalar_prefetch=0,
            grid=(N,),
            in_specs=[pl.BlockSpec((1, Cin, HWp), lambda n: (n, 0, 0)),
                      pl.BlockSpec((Cout, 9 * Cin_pad), lambda n: (0, 0)),
                      pl.BlockSpec((Cout, 1), lambda n: (0, 0)),
                      pl.BlockSpec((Cout, 9 * Cout_pad), lambda n: (0, 0)),
                      pl.BlockSpec((Cout, 1), lambda n: (0, 0))],
            out_specs=pl.BlockSpec((1, Cout, M2), lambda n: (n, 0, 0)),
            scratch_shapes=[pltpu.VMEM((9 * Cin_pad, M1), jnp.float32),
                            pltpu.VMEM((Cout, M1 + _H1PAD), jnp.float32),
                            pltpu.VMEM((9 * Cout_pad, M2), jnp.float32)]),
        compiler_params=pltpu.CompilerParams(dimension_semantics=("parallel",)),
        cost_estimate=pl.CostEstimate(flops=int(flops), transcendentals=0,
                                      bytes_accessed=int(bytes_accessed)),
    )(x_cat_flat, w1t, b1, w2t, b2)
    return out_flat


# ----------------------------------------------------------------------------
# Bilinear resize as exact separable resize matrices applied in NCHW (XLA glue).
# Matches PyTorch F.interpolate(mode='bilinear') semantics.  `extra_zero_rows`
# folds the kernel's tap-overrun padding directly into the height matrix.
# ----------------------------------------------------------------------------
def _bilinear_matrix(out_size, in_size, align_corners, extra_zero_rows=0):
    i = np.arange(out_size, dtype=np.float64)
    if align_corners:
        src = (i * (in_size - 1) / (out_size - 1)) if out_size > 1 else np.zeros_like(i)
    else:
        src = (i + 0.5) * (in_size / out_size) - 0.5
        src = np.maximum(src, 0.0)
    lo = np.clip(np.floor(src).astype(np.int64), 0, in_size - 1)
    hi = np.minimum(lo + 1, in_size - 1)
    frac = src - lo
    m = np.zeros((out_size + extra_zero_rows, in_size), dtype=np.float64)
    m[np.arange(out_size), lo] += 1.0 - frac
    m[np.arange(out_size), hi] += frac
    return jnp.asarray(m, jnp.float32)


def bilinear_resize_nchw(x, out_h, out_w, align_corners, extra_zero_rows=0):
    rh = _bilinear_matrix(out_h, x.shape[2], align_corners, extra_zero_rows)
    rw = _bilinear_matrix(out_w, x.shape[3], align_corners)
    y = jnp.einsum('oh,nchw->ncow', rh, x)
    y = jnp.einsum('pw,ncow->ncop', rw, y)
    return y


# ----------------------------------------------------------------------------
# DecodingBlock_LeakyRelu forward (batch_norm=False, upsampling=True)
# ----------------------------------------------------------------------------
def decoding_block_forward(input1_nchw, input2_nchw, p):
    N = input2_nchw.shape[0]
    Hup, Wup = 2 * input2_nchw.shape[2], 2 * input2_nchw.shape[3]
    Cs = input1_nchw.shape[1]                     # skip channels = in_size - out_size
    Cout = p['w2'].shape[-1]

    # Both branches resized directly in NCHW (no layout transposes anywhere); one
    # extra zero output row gives the flattened-spatial bounds padding for free.
    up2 = bilinear_resize_nchw(input2_nchw, Hup, Wup, align_corners=False, extra_zero_rows=1)
    out1 = bilinear_resize_nchw(input1_nchw, Hup, Wup, align_corners=True, extra_zero_rows=1)

    # Fold the 1x1 up-conv (w_up, b_up) into conv1's weights (drops the standalone
    # conv1x1 pass and its HBM roundtrip):
    #   cat_patch @ w1[k] = skip_patch @ w1_skip[k] + (up_patch @ w_up + b_up) @ w1_up[k]
    w1_skip = p['w1'][:, :Cs, :]                                   # (9, Cs, Cout)
    w1_up = p['w1'][:, Cs:, :]                                     # (9, Cout, Cout)
    w1_up_folded = jnp.einsum('co,koq->kcq', p['w_up'], w1_up)     # (9, Cu, Cout)
    b1_folded = p['b1'] + jnp.einsum('o,koq->q', p['b_up'], w1_up)

    Cu = up2.shape[1]
    Ccat = Cs + Cu
    Cin_pad = _round_up(Ccat, 8)
    Cout_pad = _round_up(Cout, 8)

    # Tap-stacked, per-tap zero-padded (to a sublane multiple), transposed weights.
    w1_cat = jnp.concatenate([w1_skip, w1_up_folded], axis=1)      # (9, Ccat, Cout)
    w1_pad = jnp.zeros((9, Cin_pad, Cout), jnp.float32).at[:, :Ccat, :].set(w1_cat)
    w1t = w1_pad.reshape(9 * Cin_pad, Cout).T                      # (Cout, 9*Cin_pad)
    w2_pad = jnp.zeros((9, Cout_pad, Cout), jnp.float32).at[:, :Cout, :].set(p['w2'])
    w2t = w2_pad.reshape(9 * Cout_pad, Cout).T                     # (Cout, 9*Cout_pad)

    # Concatenate branches along channels (conv1 becomes a single K=9*Ccat matmul)
    # and flatten spatial; the extra zero row is the tap-overrun padding.
    x_cat = jnp.concatenate([out1, up2], axis=1)                   # (N, Ccat, Hup+1, Wup)
    x_cat_flat = x_cat.reshape(N, Ccat, (Hup + 1) * Wup)

    out_flat = fused_double_conv(x_cat_flat, w1t, b1_folded.reshape(Cout, 1),
                                 w2t, p['b2'].reshape(Cout, 1),
                                 H=Hup, W=Wup, Cout=Cout)          # Pallas

    Ho2, Wo2 = Hup - 4, Wup - 4
    # Drop the full-width wrap-around (garbage) columns; result is already NCHW.
    return out_flat.reshape(N, Cout, Ho2, Wup)[:, :, :, :Wo2]


def init_params(key, in_size, out_size):
    ks = jax.random.split(key, 6)
    s = 0.1
    return dict(
        w_up=s * jax.random.normal(ks[0], (in_size, out_size), jnp.float32),
        b_up=s * jax.random.normal(ks[1], (out_size,), jnp.float32),
        w1=s * jax.random.normal(ks[2], (9, in_size, out_size), jnp.float32),
        b1=s * jax.random.normal(ks[3], (out_size,), jnp.float32),
        w2=s * jax.random.normal(ks[4], (9, out_size, out_size), jnp.float32),
        b2=s * jax.random.normal(ks[5], (out_size,), jnp.float32),
    )


# ----------------------------------------------------------------------------
# Pure-JAX reference (unfused, lax.conv) for a correctness sanity check.
# Note: in-kernel jnp.dot uses the MXU's default f32 precision; the test
# tolerance is kept at 2e-2 to cover it versus this Precision.HIGHEST reference.
# ----------------------------------------------------------------------------
def _conv3x3_valid_ref(x_nchw, w9, b):
    w = w9.reshape(3, 3, w9.shape[1], w9.shape[2])   # HWIO
    y = lax.conv_general_dilated(
        x_nchw, w, window_strides=(1, 1), padding='VALID',
        dimension_numbers=('NCHW', 'HWIO', 'NCHW'),
        precision=lax.Precision.HIGHEST)
    return y + b.reshape(1, -1, 1, 1)


def reference_forward(input1_nchw, input2_nchw, p):
    Hup, Wup = 2 * input2_nchw.shape[2], 2 * input2_nchw.shape[3]
    up2 = bilinear_resize_nchw(input2_nchw, Hup, Wup, align_corners=False)
    out2 = jnp.einsum('nchw,co->nohw', up2, p['w_up'],
                      precision=lax.Precision.HIGHEST) + p['b_up'].reshape(1, -1, 1, 1)
    out1 = bilinear_resize_nchw(input1_nchw, Hup, Wup, align_corners=True)
    cat = jnp.concatenate([out1, out2], axis=1)
    h = _leaky(_conv3x3_valid_ref(cat, p['w1'], p['b1']))
    h = _leaky(_conv3x3_valid_ref(h, p['w2'], p['b2']))
    return h


if __name__ == "__main__":
    in_size, out_size, N = 8, 4, 2
    key = jax.random.PRNGKey(0)
    k1, k2, kw = jax.random.split(key, 3)
    # input1 is the skip connection (in_size - out_size channels, larger spatial);
    # input2 is the decoder feature (in_size channels).
    input1 = jax.random.normal(k1, (N, in_size - out_size, 18, 18), jnp.float32)
    input2 = jax.random.normal(k2, (N, in_size, 8, 8), jnp.float32)
    params = init_params(kw, in_size, out_size)

    fwd = jax.jit(lambda a, b: decoding_block_forward(a, b, params))
    out = fwd(input1, input2)
    jax.block_until_ready(out)

    ref = reference_forward(input1, input2, params)
    assert out.shape == (N, out_size, 12, 12), out.shape
    np.testing.assert_allclose(np.asarray(out), np.asarray(ref), rtol=2e-2, atol=2e-2)
    print("KERNEL_OK")
</pallas_src>

<mosaic_0001>
module attributes {stable_mosaic.version = 11 : i64} {
  func.func @_fused_double_conv_kernel(%arg0: i32, %arg1: memref<1x12x272xf32, #tpu.memory_space<vmem>>, %arg2: memref<4x144xf32, #tpu.memory_space<vmem>>, %arg3: memref<4x1xf32, #tpu.memory_space<vmem>>, %arg4: memref<4x72xf32, #tpu.memory_space<vmem>>, %arg5: memref<4x1xf32, #tpu.memory_space<vmem>>, %arg6: memref<1x4x192xf32, #tpu.memory_space<vmem>>, %arg7: memref<144x224xf32, #tpu.memory_space<vmem>>, %arg8: memref<4x232xf32, #tpu.memory_space<vmem>>, %arg9: memref<72x192xf32, #tpu.memory_space<vmem>>) attributes {dimension_semantics = [#tpu.dimension_semantics<parallel>], iteration_bounds = array<i64: 2>, scalar_prefetch = 0 : i64, scratch_operands = 3 : i64, tpu.core_type = #tpu.core_type<tc>, window_params = [{transform_indices = @transform_0, window_bounds = array<i64: 1, 12, 272>}, {pipeline_mode = #tpu.pipeline_mode<synchronous>, transform_indices = @transform_1, window_bounds = array<i64: 4, 144>}, {pipeline_mode = #tpu.pipeline_mode<synchronous>, transform_indices = @transform_2, window_bounds = array<i64: 4, 1>}, {pipeline_mode = #tpu.pipeline_mode<synchronous>, transform_indices = @transform_3, window_bounds = array<i64: 4, 72>}, {pipeline_mode = #tpu.pipeline_mode<synchronous>, transform_indices = @transform_4, window_bounds = array<i64: 4, 1>}, {transform_indices = @transform_5, window_bounds = array<i64: 1, 4, 192>}]} {
    %cst = arith.constant 0.000000e+00 : f32
    %0 = vector.broadcast %cst : f32 to vector<144x224xf32>
    %c0 = arith.constant 0 : index
    %c0_0 = arith.constant 0 : index
    %1 = vector.load %arg7[%c0, %c0_0] : memref<144x224xf32, #tpu.memory_space<vmem>>, vector<144x224xf32>
    tpu.vector_store %arg7[%c0, %c0_0], %0 {strides = array<i32>} : memref<144x224xf32, #tpu.memory_space<vmem>>, vector<144x224xf32>,
    %cst_1 = arith.constant 0.000000e+00 : f32
    %2 = vector.broadcast %cst_1 : f32 to vector<72x192xf32>
    %c0_2 = arith.constant 0 : index
    %c0_3 = arith.constant 0 : index
    %3 = vector.load %arg9[%c0_2, %c0_3] : memref<72x192xf32, #tpu.memory_space<vmem>>, vector<72x192xf32>
    tpu.vector_store %arg9[%c0_2, %c0_3], %2 {strides = array<i32>} : memref<72x192xf32, #tpu.memory_space<vmem>>, vector<72x192xf32>,
    %c0_4 = arith.constant 0 : index
    %c0_5 = arith.constant 0 : index
    %c0_6 = arith.constant 0 : index
    %4 = vector.load %arg1[%c0_4, %c0_5, %c0_6] : memref<1x12x272xf32, #tpu.memory_space<vmem>>, vector<1x12x224xf32>
    %5 = vector.shape_cast %4 : vector<1x12x224xf32> to vector<12x224xf32>
    %c0_7 = arith.constant 0 : index
    %c0_8 = arith.constant 0 : index
    %6 = vector.load %arg7[%c0_7, %c0_8] : memref<144x224xf32, #tpu.memory_space<vmem>>, vector<12x224xf32>
    tpu.vector_store %arg7[%c0_7, %c0_8], %5 {strides = array<i32>} : memref<144x224xf32, #tpu.memory_space<vmem>>, vector<12x224xf32>,
    %c0_9 = arith.constant 0 : index
    %c0_10 = arith.constant 0 : index
    %c1 = arith.constant 1 : index
    %7 = vector.load %arg1[%c0_9, %c0_10, %c1] : memref<1x12x272xf32, #tpu.memory_space<vmem>>, vector<1x12x224xf32>
    %8 = vector.shape_cast %7 : vector<1x12x224xf32> to vector<12x224xf32>
    %c16 = arith.constant 16 : index
    %c0_11 = arith.constant 0 : index
    %9 = vector.load %arg7[%c16, %c0_11] : memref<144x224xf32, #tpu.memory_space<vmem>>, vector<12x224xf32>
    tpu.vector_store %arg7[%c16, %c0_11], %8 {strides = array<i32>} : memref<144x224xf32, #tpu.memory_space<vmem>>, vector<12x224xf32>,
    %c0_12 = arith.constant 0 : index
    %c0_13 = arith.constant 0 : index
    %c2 = arith.constant 2 : index
    %10 = vector.load %arg1[%c0_12, %c0_13, %c2] : memref<1x12x272xf32, #tpu.memory_space<vmem>>, vector<1x12x224xf32>
    %11 = vector.shape_cast %10 : vector<1x12x224xf32> to vector<12x224xf32>
    %c32 = arith.constant 32 : index
    %c0_14 = arith.constant 0 : index
    %12 = vector.load %arg7[%c32, %c0_14] : memref<144x224xf32, #tpu.memory_space<vmem>>, vector<12x224xf32>
    tpu.vector_store %arg7[%c32, %c0_14], %11 {strides = array<i32>} : memref<144x224xf32, #tpu.memory_space<vmem>>, vector<12x224xf32>,
    %c0_15 = arith.constant 0 : index
    %c0_16 = arith.constant 0 : index
    %c16_17 = arith.constant 16 : index
    %13 = vector.load %arg1[%c0_15, %c0_16, %c16_17] : memref<1x12x272xf32, #tpu.memory_space<vmem>>, vector<1x12x224xf32>
    %14 = vector.shape_cast %13 : vector<1x12x224xf32> to vector<12x224xf32>
    %c48 = arith.constant 48 : index
    %c0_18 = arith.constant 0 : index
    %15 = vector.load %arg7[%c48, %c0_18] : memref<144x224xf32, #tpu.memory_space<vmem>>, vector<12x224xf32>
    tpu.vector_store %arg7[%c48, %c0_18], %14 {strides = array<i32>} : memref<144x224xf32, #tpu.memory_space<vmem>>, vector<12x224xf32>,
    %c0_19 = arith.constant 0 : index
    %c0_20 = arith.constant 0 : index
    %c17 = arith.constant 17 : index
    %16 = vector.load %arg1[%c0_19, %c0_20, %c17] : memref<1x12x272xf32, #tpu.memory_space<vmem>>, vector<1x12x224xf32>
    %17 = vector.shape_cast %16 : vector<1x12x224xf32> to vector<12x224xf32>
    %c64 = arith.constant 64 : index
    %c0_21 = arith.constant 0 : index
    %18 = vector.load %arg7[%c64, %c0_21] : memref<144x224xf32, #tpu.memory_space<vmem>>, vector<12x224xf32>
    tpu.vector_store %arg7[%c64, %c0_21], %17 {strides = array<i32>} : memref<144x224xf32, #tpu.memory_space<vmem>>, vector<12x224xf32>,
    %c0_22 = arith.constant 0 : index
    %c0_23 = arith.constant 0 : index
    %c18 = arith.constant 18 : index
    %19 = vector.load %arg1[%c0_22, %c0_23, %c18] : memref<1x12x272xf32, #tpu.memory_space<vmem>>, vector<1x12x224xf32>
    %20 = vector.shape_cast %19 : vector<1x12x224xf32> to vector<12x224xf32>
    %c80 = arith.constant 80 : index
    %c0_24 = arith.constant 0 : index
    %21 = vector.load %arg7[%c80, %c0_24] : memref<144x224xf32, #tpu.memory_space<vmem>>, vector<12x224xf32>
    tpu.vector_store %arg7[%c80, %c0_24], %20 {strides = array<i32>} : memref<144x224xf32, #tpu.memory_space<vmem>>, vector<12x224xf32>,
    %c0_25 = arith.constant 0 : index
    %c0_26 = arith.constant 0 : index
    %c32_27 = arith.constant 32 : index
    %22 = vector.load %arg1[%c0_25, %c0_26, %c32_27] : memref<1x12x272xf32, #tpu.memory_space<vmem>>, vector<1x12x224xf32>
    %23 = vector.shape_cast %22 : vector<1x12x224xf32> to vector<12x224xf32>
    %c96 = arith.constant 96 : index
    %c0_28 = arith.constant 0 : index
    %24 = vector.load %arg7[%c96, %c0_28] : memref<144x224xf32, #tpu.memory_space<vmem>>, vector<12x224xf32>
    tpu.vector_store %arg7[%c96, %c0_28], %23 {strides = array<i32>} : memref<144x224xf32, #tpu.memory_space<vmem>>, vector<12x224xf32>,
    %c0_29 = arith.constant 0 : index
    %c0_30 = arith.constant 0 : index
    %c33 = arith.constant 33 : index
    %25 = vector.load %arg1[%c0_29, %c0_30, %c33] : memref<1x12x272xf32, #tpu.memory_space<vmem>>, vector<1x12x224xf32>
    %26 = vector.shape_cast %25 : vector<1x12x224xf32> to vector<12x224xf32>
    %c112 = arith.constant 112 : index
    %c0_31 = arith.constant 0 : index
    %27 = vector.load %arg7[%c112, %c0_31] : memref<144x224xf32, #tpu.memory_space<vmem>>, vector<12x224xf32>
    tpu.vector_store %arg7[%c112, %c0_31], %26 {strides = array<i32>} : memref<144x224xf32, #tpu.memory_space<vmem>>, vector<12x224xf32>,
    %c0_32 = arith.constant 0 : index
    %c0_33 = arith.constant 0 : index
    %c34 = arith.constant 34 : index
    %28 = vector.load %arg1[%c0_32, %c0_33, %c34] : memref<1x12x272xf32, #tpu.memory_space<vmem>>, vector<1x12x224xf32>
    %29 = vector.shape_cast %28 : vector<1x12x224xf32> to vector<12x224xf32>
    %c128 = arith.constant 128 : index
    %c0_34 = arith.constant 0 : index
    %30 = vector.load %arg7[%c128, %c0_34] : memref<144x224xf32, #tpu.memory_space<vmem>>, vector<12x224xf32>
    tpu.vector_store %arg7[%c128, %c0_34], %29 {strides = array<i32>} : memref<144x224xf32, #tpu.memory_space<vmem>>, vector<12x224xf32>,
    %c0_35 = arith.constant 0 : index
    %c0_36 = arith.constant 0 : index
    %31 = vector.load %arg2[%c0_35, %c0_36] : memref<4x144xf32, #tpu.memory_space<vmem>>, vector<4x144xf32>
    %c0_37 = arith.constant 0 : index
    %c0_38 = arith.constant 0 : index
    %32 = vector.load %arg7[%c0_37, %c0_38] : memref<144x224xf32, #tpu.memory_space<vmem>>, vector<144x224xf32>
    %cst_39 = arith.constant dense<0.000000e+00> : vector<4x224xf32>
    %33 = tpu.matmul %31, %32, %cst_39 {dimension_numbers = #tpu.dot_dimension_numbers<[1], [0], [0], [1], [0, 0, 1, 1], [], []>} : vector<4x144xf32>, vector<144x224xf32>, vector<4x224xf32> -> vector<4x224xf32>
    %c0_40 = arith.constant 0 : index
    %c0_41 = arith.constant 0 : index
    %34 = vector.load %arg3[%c0_40, %c0_41] : memref<4x1xf32, #tpu.memory_space<vmem>>, vector<4x1xf32>
    %35 = vector.broadcast %34 : vector<4x1xf32> to vector<4x224xf32>
    %36 = arith.addf %33, %35 : vector<4x224xf32>
    %cst_42 = arith.constant 0.000000e+00 : f32
    %37 = vector.broadcast %cst_42 : f32 to vector<4x224xf32>
    %38 = arith.cmpf ogt, %36, %37 : vector<4x224xf32>
    %cst_43 = arith.constant 0.00999999977 : f32
    %39 = vector.broadcast %cst_43 : f32 to vector<4x224xf32>
    %40 = arith.mulf %39, %36 : vector<4x224xf32>
    %41 = arith.select %38, %36, %40 : vector<4x224xi1>, vector<4x224xf32>
    %c0_44 = arith.constant 0 : index
    %c0_45 = arith.constant 0 : index
    %42 = vector.load %arg8[%c0_44, %c0_45] : memref<4x232xf32, #tpu.memory_space<vmem>>, vector<4x224xf32>
    tpu.vector_store %arg8[%c0_44, %c0_45], %41 {strides = array<i32>} : memref<4x232xf32, #tpu.memory_space<vmem>>, vector<4x224xf32>,
    %cst_46 = arith.constant 0.000000e+00 : f32
    %43 = vector.broadcast %cst_46 : f32 to vector<4x8xf32>
    %c0_47 = arith.constant 0 : index
    %c224 = arith.constant 224 : index
    %44 = vector.load %arg8[%c0_47, %c224] : memref<4x232xf32, #tpu.memory_space<vmem>>, vector<4x8xf32>
    tpu.vector_store %arg8[%c0_47, %c224], %43 {strides = array<i32>} : memref<4x232xf32, #tpu.memory_space<vmem>>, vector<4x8xf32>,
    %c0_48 = arith.constant 0 : index
    %c0_49 = arith.constant 0 : index
    %45 = vector.load %arg8[%c0_48, %c0_49] : memref<4x232xf32, #tpu.memory_space<vmem>>, vector<4x192xf32>
    %c0_50 = arith.constant 0 : index
    %c0_51 = arith.constant 0 : index
    %46 = vector.load %arg9[%c0_50, %c0_51] : memref<72x192xf32, #tpu.memory_space<vmem>>, vector<4x192xf32>
    tpu.vector_store %arg9[%c0_50, %c0_51], %45 {strides = array<i32>} : memref<72x192xf32, #tpu.memory_space<vmem>>, vector<4x192xf32>,
    %c0_52 = arith.constant 0 : index
    %c1_53 = arith.constant 1 : index
    %47 = vector.load %arg8[%c0_52, %c1_53] : memref<4x232xf32, #tpu.memory_space<vmem>>, vector<4x192xf32>
    %c8 = arith.constant 8 : index
    %c0_54 = arith.constant 0 : index
    %48 = vector.load %arg9[%c8, %c0_54] : memref<72x192xf32, #tpu.memory_space<vmem>>, vector<4x192xf32>
    tpu.vector_store %arg9[%c8, %c0_54], %47 {strides = array<i32>} : memref<72x192xf32, #tpu.memory_space<vmem>>, vector<4x192xf32>,
    %c0_55 = arith.constant 0 : index
    %c2_56 = arith.constant 2 : index
    %49 = vector.load %arg8[%c0_55, %c2_56] : memref<4x232xf32, #tpu.memory_space<vmem>>, vector<4x192xf32>
    %c16_57 = arith.constant 16 : index
    %c0_58 = arith.constant 0 : index
    %50 = vector.load %arg9[%c16_57, %c0_58] : memref<72x192xf32, #tpu.memory_space<vmem>>, vector<4x192xf32>
    tpu.vector_store %arg9[%c16_57, %c0_58], %49 {strides = array<i32>} : memref<72x192xf32, #tpu.memory_space<vmem>>, vector<4x192xf32>,
    %c0_59 = arith.constant 0 : index
    %c16_60 = arith.constant 16 : index
    %51 = vector.load %arg8[%c0_59, %c16_60] : memref<4x232xf32, #tpu.memory_space<vmem>>, vector<4x192xf32>
    %c24 = arith.constant 24 : index
    %c0_61 = arith.constant 0 : index
    %52 = vector.load %arg9[%c24, %c0_61] : memref<72x192xf32, #tpu.memory_space<vmem>>, vector<4x192xf32>
    tpu.vector_store %arg9[%c24, %c0_61], %51 {strides = array<i32>} : memref<72x192xf32, #tpu.memory_space<vmem>>, vector<4x192xf32>,
    %c0_62 = arith.constant 0 : index
    %c17_63 = arith.constant 17 : index
    %53 = vector.load %arg8[%c0_62, %c17_63] : memref<4x232xf32, #tpu.memory_space<vmem>>, vector<4x192xf32>
    %c32_64 = arith.constant 32 : index
    %c0_65 = arith.constant 0 : index
    %54 = vector.load %arg9[%c32_64, %c0_65] : memref<72x192xf32, #tpu.memory_space<vmem>>, vector<4x192xf32>
    tpu.vector_store %arg9[%c32_64, %c0_65], %53 {strides = array<i32>} : memref<72x192xf32, #tpu.memory_space<vmem>>, vector<4x192xf32>,
    %c0_66 = arith.constant 0 : index
    %c18_67 = arith.constant 18 : index
    %55 = vector.load %arg8[%c0_66, %c18_67] : memref<4x232xf32, #tpu.memory_space<vmem>>, vector<4x192xf32>
    %c40 = arith.constant 40 : index
    %c0_68 = arith.constant 0 : index
    %56 = vector.load %arg9[%c40, %c0_68] : memref<72x192xf32, #tpu.memory_space<vmem>>, vector<4x192xf32>
    tpu.vector_store %arg9[%c40, %c0_68], %55 {strides = array<i32>} : memref<72x192xf32, #tpu.memory_space<vmem>>, vector<4x192xf32>,
    %c0_69 = arith.constant 0 : index
    %c32_70 = arith.constant 32 : index
    %57 = vector.load %arg8[%c0_69, %c32_70] : memref<4x232xf32, #tpu.memory_space<vmem>>, vector<4x192xf32>
    %c48_71 = arith.constant 48 : index
    %c0_72 = arith.constant 0 : index
    %58 = vector.load %arg9[%c48_71, %c0_72] : memref<72x192xf32, #tpu.memory_space<vmem>>, vector<4x192xf32>
    tpu.vector_store %arg9[%c48_71, %c0_72], %57 {strides = array<i32>} : memref<72x192xf32, #tpu.memory_space<vmem>>, vector<4x192xf32>,
    %c0_73 = arith.constant 0 : index
    %c33_74 = arith.constant 33 : index
    %59 = vector.load %arg8[%c0_73, %c33_74] : memref<4x232xf32, #tpu.memory_space<vmem>>, vector<4x192xf32>
    %c56 = arith.constant 56 : index
    %c0_75 = arith.constant 0 : index
    %60 = vector.load %arg9[%c56, %c0_75] : memref<72x192xf32, #tpu.memory_space<vmem>>, vector<4x192xf32>
    tpu.vector_store %arg9[%c56, %c0_75], %59 {strides = array<i32>} : memref<72x192xf32, #tpu.memory_space<vmem>>, vector<4x192xf32>,
    %c0_76 = arith.constant 0 : index
    %c34_77 = arith.constant 34 : index
    %61 = vector.load %arg8[%c0_76, %c34_77] : memref<4x232xf32, #tpu.memory_space<vmem>>, vector<4x192xf32>
    %c64_78 = arith.constant 64 : index
    %c0_79 = arith.constant 0 : index
    %62 = vector.load %arg9[%c64_78, %c0_79] : memref<72x192xf32, #tpu.memory_space<vmem>>, vector<4x192xf32>
    tpu.vector_store %arg9[%c64_78, %c0_79], %61 {strides = array<i32>} : memref<72x192xf32, #tpu.memory_space<vmem>>, vector<4x192xf32>,
    %c0_80 = arith.constant 0 : index
    %c0_81 = arith.constant 0 : index
    %63 = vector.load %arg4[%c0_80, %c0_81] : memref<4x72xf32, #tpu.memory_space<vmem>>, vector<4x72xf32>
    %c0_82 = arith.constant 0 : index
    %c0_83 = arith.constant 0 : index
    %64 = vector.load %arg9[%c0_82, %c0_83] : memref<72x192xf32, #tpu.memory_space<vmem>>, vector<72x192xf32>
    %cst_84 = arith.constant dense<0.000000e+00> : vector<4x192xf32>
    %65 = tpu.matmul %63, %64, %cst_84 {dimension_numbers = #tpu.dot_dimension_numbers<[1], [0], [0], [1], [0, 0, 1, 1], [], []>} : vector<4x72xf32>, vector<72x192xf32>, vector<4x192xf32> -> vector<4x192xf32>
    %c0_85 = arith.constant 0 : index
    %c0_86 = arith.constant 0 : index
    %66 = vector.load %arg5[%c0_85, %c0_86] : memref<4x1xf32, #tpu.memory_space<vmem>>, vector<4x1xf32>
    %67 = vector.broadcast %66 : vector<4x1xf32> to vector<4x192xf32>
    %68 = arith.addf %65, %67 : vector<4x192xf32>
    %cst_87 = arith.constant 0.000000e+00 : f32
    %69 = vector.broadcast %cst_87 : f32 to vector<4x192xf32>
    %70 = arith.cmpf ogt, %68, %69 : vector<4x192xf32>
    %cst_88 = arith.constant 0.00999999977 : f32
    %71 = vector.broadcast %cst_88 : f32 to vector<4x192xf32>
    %72 = arith.mulf %71, %68 : vector<4x192xf32>
    %73 = arith.select %70, %68, %72 : vector<4x192xi1>, vector<4x192xf32>
    %c0_89 = arith.constant 0 : index
    %c0_90 = arith.constant 0 : index
    %c0_91 = arith.constant 0 : index
    %74 = vector.load %arg6[%c0_89, %c0_90, %c0_91] : memref<1x4x192xf32, #tpu.memory_space<vmem>>, vector<1x4x192xf32>
    %75 = vector.shape_cast %74 : vector<1x4x192xf32> to vector<4x192xf32>
    %76 = vector.shape_cast %73 : vector<4x192xf32> to vector<1x4x192xf32>
    tpu.vector_store %arg6[%c0_89, %c0_90, %c0_91], %76 {strides = array<i32>} : memref<1x4x192xf32, #tpu.memory_space<vmem>>, vector<1x4x192xf32>,
    return
  }
  func.func @transform_0(%arg0: i32) -> (i32, i32, i32) {
    %c0_i32 = arith.constant 0 : i32
    %c0_i32_0 = arith.constant 0 : i32
    %c0_i32_1 = arith.constant 0 : i32
    return %arg0, %c0_i32, %c0_i32_0 : i32, i32, i32
  }
  func.func @transform_1(%arg0: i32) -> (i32, i32) {
    %c0_i32 = arith.constant 0 : i32
    %c0_i32_0 = arith.constant 0 : i32
    %c0_i32_1 = arith.constant 0 : i32
    return %c0_i32, %c0_i32_0 : i32, i32
  }
  func.func @transform_2(%arg0: i32) -> (i32, i32) {
    %c0_i32 = arith.constant 0 : i32
    %c0_i32_0 = arith.constant 0 : i32
    %c0_i32_1 = arith.constant 0 : i32
    return %c0_i32, %c0_i32_0 : i32, i32
  }
  func.func @transform_3(%arg0: i32) -> (i32, i32) {
    %c0_i32 = arith.constant 0 : i32
    %c0_i32_0 = arith.constant 0 : i32
    %c0_i32_1 = arith.constant 0 : i32
    return %c0_i32, %c0_i32_0 : i32, i32
  }
  func.func @transform_4(%arg0: i32) -> (i32, i32) {
    %c0_i32 = arith.constant 0 : i32
    %c0_i32_0 = arith.constant 0 : i32
    %c0_i32_1 = arith.constant 0 : i32
    return %c0_i32, %c0_i32_0 : i32, i32
  }
  func.func @transform_5(%arg0: i32) -> (i32, i32, i32) {
    %c0_i32 = arith.constant 0 : i32
    %c0_i32_0 = arith.constant 0 : i32
    %c0_i32_1 = arith.constant 0 : i32
    return %arg0, %c0_i32, %c0_i32_0 : i32, i32, i32
  }
}

</mosaic_0001>

<bundles_post_ra>
// kernel: _lambda_.1
= control target key start
LH: loop header
LB: loop body
LE: loop exit
PB: predicated region body
PF: predicated region fallthrough
CT: control target
= control target key end

     0   :  { %s1066_s18 = smov 0   ;;  %s1335_s0 = inlined_call_operand.vmem [shape: f32[2,12,272], index: 0, kind: input, shape index: {}]   ;;  %s1336_s1 = inlined_call_operand.vmem [shape: f32[4,144], index: 1, kind: input, shape index: {}]   ;;  %s1337_s2 = inlined_call_operand.vmem [shape: f32[4,1], index: 2, kind: input, shape index: {}]   ;;  %s1338_s3 = inlined_call_operand.vmem [shape: f32[4,72], index: 3, kind: input, shape index: {}]   ;;  %s1339_s4 = inlined_call_operand.vmem [shape: f32[4,1], index: 4, kind: input, shape index: {}]   ;;  %s1340_s5 = inlined_call_operand.vmem [shape: f32[2,4,192], index: 5, kind: output, shape index: {}]  }
   0x1 LB: > { %s931_s19 = sadd.s32 4294967295, %s1024_s18   ;;  %p935_p0 = scmp.ge.s32.totalorder %s1024_s18, 1  ;;  %s1024_s18 = sphi %s1066_s18, %s15_s18  }
   0x2   : > { %p187_p1 = scmp.lt.s32.totalorder %s1024_s18, 3 }
   0x4   : > { %p188_p2 = pnand %p935_p0, %p187_p1 }
   0x5   : > { %p1076_p3 = scmp.lt.s32.totalorder (!%p188_p2), %s931_s19, 1  ;;  %vm226_vm0 = vcmask (!%p188_p2), 785408   ;;  %v1026_v0 = vmov (!%p188_p2), 0.0   ;;  %s1027_s25 = smov (!%p188_p2), 127   ;;  %vm288_vm1 = vcmask (!%p188_p2), 781312   ;;  %v1230_v29 = vld [vmem:[%s1336_s1] sm:$0xff] (!%p188_p2) }
   0x6   : > { %191 = sbr.rel (%p188_p2) target bundleno = 824 (0x338), region = 40  ;;  %232 = vst [vmem:[#allocation2 + $0x30] sm:$0xff] (!%p188_p2), %v1026_v0  ;;  %233 = vst.msk [vmem:[#allocation2 + $0x38] sm:$0xff] (!%p188_p2), %vm226_vm0, %v1026_v0  ;;  %856 = vmatprep.mubr.f32.mxu1 (!%p188_p2), %v1026_v0  ;;  %s1028_s26 = smov (!%p188_p2), 126   ;;  %v569_v30 = vcombine.high (!%p188_p2), %v1230_v29, %v1230_v29  ;;  %vm570_vm2 = vcmask (!%p188_p2), 130048   ;;  %v1035_v32 = vmov (!%p188_p2), 0  }
   0x7   : > { %227 = vst.msk [vmem:[#allocation2 + $0x8] sm:$0xff] (!%p188_p2), %vm226_vm0, %v1026_v0  ;;  %228 = vst [vmem:[#allocation2 + $0x10] sm:$0xff] (!%p188_p2), %v1026_v0  ;;  %s1029_s27 = smov (!%p188_p2), 112   ;;  %s1030_s28 = smov (!%p188_p2), 111   ;;  %v562_v31 = vld [vmem:[%s1337_s2] sm:$0xf] (!%p188_p2)  ;;  %1015 = vset.pattern.permute.xlu0 (!%p188_p2), %v1035_v32 }
   0x8   : > { %229 = vst.msk [vmem:[#allocation2 + $0x18] sm:$0xff] (!%p188_p2), %vm226_vm0, %v1026_v0  ;;  %231 = vst.msk [vmem:[#allocation2 + $0x28] sm:$0xff] (!%p188_p2), %vm226_vm0, %v1026_v0  ;;  %s1031_s29 = smov (!%p188_p2), 110   ;;  %s1032_s30 = smov (!%p188_p2), 96   ;;  %939 = vmatprep.mubr.msk.f32.mxu0 (!%p188_p2), %vm570_vm2, %v569_v30  ;;  %vm306_vm3 = vcmask (!%p188_p2), 1039360   ;;  %vm333_vm4 = vcmask (!%p188_p2), 1031168  }
   0x9   : > { %235 = vst.msk [vmem:[#allocation2 + $0x48] sm:$0xff] (!%p188_p2), %vm226_vm0, %v1026_v0  ;;  %236 = vst [vmem:[#allocation2 + $0x50] sm:$0xff] (!%p188_p2), %v1026_v0  ;;  %s1033_s6 = smov (!%p188_p2), 95   ;;  %s1034_s7 = smov (!%p188_p2), 94   ;;  %vm360_vm5 = vcmask (!%p188_p2), 916480   ;;  %vm387_vm6 = vcmask (!%p188_p2), 908288  }
   0xa   : > { %237 = vst.msk [vmem:[#allocation2 + $0x58] sm:$0xff] (!%p188_p2), %vm226_vm0, %v1026_v0  ;;  %239 = vst.msk [vmem:[#allocation2 + $0x68] sm:$0xff] (!%p188_p2), %vm226_vm0, %v1026_v0  ;;  %vm414_vm7 = vcmask (!%p188_p2), 900096   ;;  %vm475_vm8 = vcmask (!%p188_p2), 777216   ;;  %vm512_vm9 = vcmask (!%p188_p2), 769024   ;;  %vm263_vm10 = vcmask (!%p188_p2), 523264  }
   0xb   : > { %240 = vst [vmem:[#allocation2 + $0x70] sm:$0xff] (!%p188_p2), %v1026_v0  ;;  %241 = vst.msk [vmem:[#allocation2 + $0x78] sm:$0xff] (!%p188_p2), %vm226_vm0, %v1026_v0  ;;  %vm654_vm12 = vcmask (!%p188_p2), 1043456   ;;  %vm655_vm13 = vcmask (!%p188_p2), 785412   ;;  %vm665_vm2 = vcmask (!%p188_p2), 519168  }
   0xc   : > { %243 = vst.msk [vmem:[#allocation2 + $0x88] sm:$0xff] (!%p188_p2), %vm226_vm0, %v1026_v0  ;;  %244 = vst [vmem:[#allocation2 + $0x90] sm:$0xff] (!%p188_p2), %v1026_v0 }
   0xd   : > { %245 = vst.msk [vmem:[#allocation2 + $0x98] sm:$0xff] %vm226_vm0, %v1026_v0  ;;  %247 = vst.msk [vmem:[#allocation2 + $0xa8] sm:$0xff] %vm226_vm0, %v1026_v0  ;;  %s1343_s19 = smov (!%p1076_p3, %s931_s19), 1 }
   0xe   : > { %248 = vst [vmem:[#allocation2 + $0xb0] sm:$0xff] %v1026_v0  ;;  %249 = vst.msk [vmem:[#allocation2 + $0xb8] sm:$0xff] %vm226_vm0, %v1026_v0  ;;  %s996_s21 = smul.u32 48, %s1343_s19  ;;  %s943_s16 = sshll.u32 %s1343_s19, 3 }
   0xf   : > { %251 = vst.msk [vmem:[#allocation2 + $0xc8] sm:$0xff] %vm226_vm0, %v1026_v0  ;;  %252 = vst [vmem:[#allocation2 + $0xd0] sm:$0xff] %v1026_v0 }
  0x10   : > { %253 = vst.msk [vmem:[#allocation2 + $0xd8] sm:$0xff] %vm226_vm0, %v1026_v0  ;;  %255 = vst.msk [vmem:[#allocation2 + $0xe8] sm:$0xff] %vm226_vm0, %v1026_v0  ;;  %s1145_s24 = scalar_lea.vmem %s1335_s0, %s996_s21  ;;  %s224_s21 = scalar_lea.vmem %s1340_s5, %s943_s16 }
  0x11   : > { %256 = vst [vmem:[#allocation2 + $0xf0] sm:$0xff] %v1026_v0  ;;  %257 = vst.msk [vmem:[#allocation2 + $0xf8] sm:$0xff] %vm226_vm0, %v1026_v0  ;;  %v292_v1 = vld [vmem:[%s1145_s24 + $0x18] sm:$0xf]  ;;  %v1149_v2 = vld [vmem:[%s1145_s24] sm:$0xff] }
  0x12   : > { %259 = vst.msk [vmem:[#allocation2 + $0x108] sm:$0xff] %vm226_vm0, %v1026_v0  ;;  %260 = vst [vmem:[#allocation2 + $0x110] sm:$0xff] %v1026_v0  ;;  %302 = vrot.lane.b32.xlu1 %v292_v1, %s1027_s25  ;;  %298 = vrot.lane.b32.xlu0 %v1149_v2, %s1027_s25  ;;  %v1155_v3 = vld [vmem:[%s1145_s24 + $0x8] sm:$0xff]  ;;  %v293_v4 = vld [vmem:[%s1145_s24 + $0x20] sm:$0xf] }
  0x13   : > { %261 = vst.msk [vmem:[#allocation2 + $0x118] sm:$0xff] %vm226_vm0, %v1026_v0  ;;  %262 = vst [vmem:[#allocation4] sm:$0xff] %v1026_v0  ;;  %v284_v5 = vld [vmem:[%s1145_s24 + $0x20] sm:$0xf]  ;;  %v283_v6 = vld [vmem:[%s1145_s24 + $0x18] sm:$0xf] }
  0x14   : > { %265 = vst [vmem:[#allocation4 + $0x10] sm:$0xff] %v1026_v0  ;;  %267 = vst [vmem:[#allocation4 + $0x20] sm:$0xff] %v1026_v0  ;;  %v320_v7 = vld [vmem:[%s1145_s24 + $0x20] sm:$0xf]  ;;  %v319_v8 = vld [vmem:[%s1145_s24 + $0x18] sm:$0xf] }
  0x15   : > { %269 = vst [vmem:[#allocation4 + $0x30] sm:$0xff] %v1026_v0  ;;  %271 = vst [vmem:[#allocation4 + $0x40] sm:$0xff] %v1026_v0  ;;  %v347_v14 = vld [vmem:[%s1145_s24 + $0x20] sm:$0xf]  ;;  %v346_v15 = vld [vmem:[%s1145_s24 + $0x18] sm:$0xf] }
  0x16   : > { %273 = vst [vmem:[#allocation4 + $0x50] sm:$0xff] %v1026_v0  ;;  %275 = vst [vmem:[#allocation4 + $0x60] sm:$0xff] %v1026_v0  ;;  %304 = vrot.lane.b32.xlu1 %v293_v4, %s1027_s25  ;;  %300 = vrot.lane.b32.xlu0 %v1155_v3, %s1027_s25  ;;  %v374_v16 = vld [vmem:[%s1145_s24 + $0x20] sm:$0xf]  ;;  %v373_v17 = vld [vmem:[%s1145_s24 + $0x18] sm:$0xf] }
  0x17   : > { %277 = vst [vmem:[#allocation4 + $0x70] sm:$0xff] %v1026_v0  ;;  %279 = vst [vmem:[#allocation4 + $0x80] sm:$0xff] %v1026_v0  ;;  %v401_v18 = vld [vmem:[%s1145_s24 + $0x20] sm:$0xf]  ;;  %v400_v19 = vld [vmem:[%s1145_s24 + $0x18] sm:$0xf] }
  0x18   : > { %286 = vst.msk [vmem:[#allocation2 + $0x8] sm:$0xff] %vm226_vm0, %v1155_v3  ;;  %287 = vst [vmem:[#allocation2 + $0x10] sm:$0xf] %v283_v6  ;;  %v428_v20 = vld [vmem:[%s1145_s24 + $0x20] sm:$0xf]  ;;  %v453_v22 = vld [vmem:[%s1145_s24 + $0x10] sm:$0xff] }
  0x19   : > { %289 = vst.msk [vmem:[#allocation2 + $0x18] sm:$0xf] %vm288_vm1, %v284_v5  ;;  %v427_v21 = vld [vmem:[%s1145_s24 + $0x18] sm:$0xf]  ;;  %v456_v23 = vld [vmem:[%s1145_s24 + $0x28] sm:$0xf]  ;;  %vm656_vm15 = vmor %vm655_vm13, %vm654_vm12 }
  0x1a   : > { %327 = vrot.lane.b32.xlu1 %v1155_v3, %s1028_s26  ;;  %325 = vrot.lane.b32.xlu0 %v1149_v2, %s1028_s26  ;;  %v455_v24 = vld [vmem:[%s1145_s24 + $0x20] sm:$0xf]  ;;  %v454_v25 = vld [vmem:[%s1145_s24 + $0x18] sm:$0xf]  ;;  %266 = vst.msk [vmem:[#allocation4 + $0x18] sm:$0xff] %vm263_vm10, %v1026_v0  ;;  %264 = vst.msk [vmem:[#allocation4 + $0x8] sm:$0xff] %vm263_vm10, %v1026_v0 }
  0x1b   : > { %v493_v26 = vld [vmem:[%s1145_s24 + $0x28] sm:$0xf]  ;;  %v492_v27 = vld [vmem:[%s1145_s24 + $0x20] sm:$0xf]  ;;  %v491_v28 = vld [vmem:[%s1145_s24 + $0x18] sm:$0xf] }
  0x1c   : > { %268 = vst.msk [vmem:[#allocation4 + $0x28] sm:$0xff] %vm263_vm10, %v1026_v0  ;;  %270 = vst.msk [vmem:[#allocation4 + $0x38] sm:$0xff] %vm263_vm10, %v1026_v0 }
  0x1d   : > { %272 = vst.msk [vmem:[#allocation4 + $0x48] sm:$0xff] %vm263_vm10, %v1026_v0  ;;  %274 = vst.msk [vmem:[#allocation4 + $0x58] sm:$0xff] %vm263_vm10, %v1026_v0 }
  0x1e   : > { %331 = vrot.lane.b32.xlu1 %v320_v7, %s1028_s26  ;;  %329 = vrot.lane.b32.xlu0 %v319_v8, %s1028_s26  ;;  %276 = vst.msk [vmem:[#allocation4 + $0x68] sm:$0xff] %vm263_vm10, %v1026_v0  ;;  %278 = vst.msk [vmem:[#allocation4 + $0x78] sm:$0xff] %vm263_vm10, %v1026_v0 }
  0x1f   : > { %v527_v9 = vld [vmem:[#allocation2 + $0x8] sm:$0xff]  ;;  %v528_v12 = vld [vmem:[#allocation2 + $0x10] sm:$0xff]  ;;  %280 = vst.msk [vmem:[#allocation4 + $0x88] sm:$0xff] %vm263_vm10, %v1026_v0 }
  0x20   : > { %v529_v10 = vld [vmem:[#allocation2 + $0x18] sm:$0xff]  ;;  %v946_v13 = vpack.c.bf16 %v528_v12, %v1149_v2 }
  0x21   : > { %v944_v11 = vpack.c.bf16 %v529_v10, %v527_v9 }
  0x22   : > { %354 = vrot.lane.b32.xlu1 %v1155_v3, %s1029_s27  ;;  %352 = vrot.lane.b32.xlu0 %v1149_v2, %s1029_s27 }
  0x23   : > { %945 = vmatprep.subr.bf16.mxu0 %v944_v11 }
  0x24   : > { %947 = vmatpush1.bf16.msra.mxu0 %v946_v13 }
  0x26   : > { %358 = vrot.lane.b32.xlu1 %v347_v14, %s1029_s27  ;;  %356 = vrot.lane.b32.xlu0 %v346_v15, %s1029_s27 }
  0x2a   : > { %381 = vrot.lane.b32.xlu1 %v1155_v3, %s1030_s28  ;;  %379 = vrot.lane.b32.xlu0 %v1149_v2, %s1030_s28 }
  0x2e   : > { %385 = vrot.lane.b32.xlu1 %v374_v16, %s1030_s28  ;;  %383 = vrot.lane.b32.xlu0 %v373_v17, %s1030_s28 }
  0x32   : > { %408 = vrot.lane.b32.xlu1 %v1155_v3, %s1031_s29  ;;  %406 = vrot.lane.b32.xlu0 %v1149_v2, %s1031_s29 }
  0x36   : > { %412 = vrot.lane.b32.xlu1 %v401_v18, %s1031_s29  ;;  %410 = vrot.lane.b32.xlu0 %v400_v19, %s1031_s29 }
  0x3a   : > { %435 = vrot.lane.b32.xlu1 %v1155_v3, %s1032_s30  ;;  %433 = vrot.lane.b32.xlu0 %v1149_v2, %s1032_s30 }
  0x3e   : > { %439 = vrot.lane.b32.xlu1 %v428_v20, %s1032_s30  ;;  %437 = vrot.lane.b32.xlu0 %v427_v21, %s1032_s30 }
  0x42   : > { %467 = vrot.lane.b32.xlu1 %v453_v22, %s1033_s6  ;;  %465 = vrot.lane.b32.xlu0 %v1155_v3, %s1033_s6 }
  0x46   : > { %473 = vrot.lane.b32.xlu1 %v456_v23, %s1033_s6  ;;  %471 = vrot.lane.b32.xlu0 %v455_v24, %s1033_s6 }
  0x4a   : > { %469 = vrot.lane.b32.xlu1 %v454_v25, %s1033_s6  ;;  %463 = vrot.lane.b32.xlu0 %v1149_v2, %s1033_s6 }
  0x4e   : > { %504 = vrot.lane.b32.xlu1 %v453_v22, %s1034_s7  ;;  %502 = vrot.lane.b32.xlu0 %v1155_v3, %s1034_s7 }
  0x52   : > { %510 = vrot.lane.b32.xlu1 %v493_v26, %s1034_s7  ;;  %508 = vrot.lane.b32.xlu0 %v492_v27, %s1034_s7 }
  0x56   : > { %506 = vrot.lane.b32.xlu1 %v491_v28, %s1034_s7  ;;  %500 = vrot.lane.b32.xlu0 %v1149_v2, %s1034_s7 }
  0x5a   : > { %565 = vperm.xlu0 %1015, %v562_v31  }
  0x84   : > { %v303_v33 = vpop.permute.xlu1 %302  ;;  %v299_v34 = vpop.permute.xlu0 %298 }
  0x88   : > { %v305_v35 = vpop.permute.xlu1 %304  ;;  %v301_v36 = vpop.permute.xlu0 %300 }
  0x89   : > { %v308_v37 = vsel %vm306_vm3, %v303_v33, %v305_v35  ;;  %316 = vst.msk [vmem:[#allocation2 + $0x38] sm:$0xf] %vm288_vm1, %v305_v35  ;;  %v307_v38 = vsel %vm306_vm3, %v299_v34, %v301_v36 }
  0x8a   : > { %314 = vst.msk [vmem:[#allocation2 + $0x28] sm:$0xff] %vm226_vm0, %v301_v36  ;;  %315 = vst [vmem:[#allocation2 + $0x30] sm:$0xf] %v308_v37 }
  0x8c   : > { %v328_v39 = vpop.permute.xlu1 %327  ;;  %v326_v40 = vpop.permute.xlu0 %325 }
  0x8d   : > { %341 = vst.msk [vmem:[#allocation2 + $0x48] sm:$0xff] %vm226_vm0, %v328_v39  ;;  %v334_v41 = vsel %vm333_vm4, %v326_v40, %v328_v39 }
  0x90   : > { %v332_v42 = vpop.permute.xlu1 %331  ;;  %v330_v43 = vpop.permute.xlu0 %329  ;;  %v533_v45 = vld [vmem:[#allocation2 + $0x38] sm:$0xff] }
  0x91   : > { %v531_v44 = vld [vmem:[#allocation2 + $0x28] sm:$0xff]  ;;  %343 = vst.msk [vmem:[#allocation2 + $0x58] sm:$0xf] %vm288_vm1, %v332_v42  ;;  %v335_v46 = vsel %vm333_vm4, %v330_v43, %v332_v42  ;;  %v532_v48 = vld [vmem:[#allocation2 + $0x30] sm:$0xff] }
  0x92   : > { %v948_v47 = vpack.c.bf16 %v533_v45, %v531_v44  ;;  %342 = vst [vmem:[#allocation2 + $0x50] sm:$0xf] %v335_v46  ;;  %v950_v49 = vpack.c.bf16 %v532_v48, %v307_v38 }
  0x94   : > { %949 = vmatprep.subr.bf16.mxu0 %v948_v47  ;;  %v355_v50 = vpop.permute.xlu1 %354  ;;  %v353_v51 = vpop.permute.xlu0 %352  ;;  %v535_v55 = vld [vmem:[#allocation2 + $0x48] sm:$0xff] }
  0x95   : > { %951 = vmatpush1.bf16.msra.mxu0 %v950_v49  ;;  %368 = vst.msk [vmem:[#allocation2 + $0x68] sm:$0xff] %vm226_vm0, %v355_v50  ;;  %v361_v52 = vsel %vm360_vm5, %v353_v51, %v355_v50 }
  0x98   : > { %v359_v53 = vpop.permute.xlu1 %358  ;;  %v357_v54 = vpop.permute.xlu0 %356  ;;  %v537_v56 = vld [vmem:[#allocation2 + $0x58] sm:$0xff] }
  0x99   : > { %370 = vst.msk [vmem:[#allocation2 + $0x78] sm:$0xf] %vm288_vm1, %v359_v53  ;;  %v362_v57 = vsel %vm360_vm5, %v357_v54, %v359_v53  ;;  %v952_v58 = vpack.c.bf16 %v537_v56, %v535_v55  ;;  %v536_v59 = vld [vmem:[#allocation2 + $0x50] sm:$0xff] }
  0x9a   : > { %369 = vst [vmem:[#allocation2 + $0x70] sm:$0xf] %v362_v57  ;;  %v954_v60 = vpack.c.bf16 %v536_v59, %v334_v41 }
  0x9b   : > { %953 = vmatprep.subr.bf16.mxu0 %v952_v58 }
  0x9c   : > { %v382_v61 = vpop.permute.xlu1 %381  ;;  %v380_v62 = vpop.permute.xlu0 %379  ;;  %955 = vmatpush1.bf16.msra.mxu0 %v954_v60  ;;  %v539_v3 = vld [vmem:[#allocation2 + $0x68] sm:$0xff] }
  0x9d   : > { %395 = vst.msk [vmem:[#allocation2 + $0x88] sm:$0xff] %vm226_vm0, %v382_v61  ;;  %v388_v63 = vsel %vm387_vm6, %v380_v62, %v382_v61 }
  0xa0   : > { %v386_v1 = vpop.permute.xlu1 %385  ;;  %v384_v2 = vpop.permute.xlu0 %383  ;;  %v541_v4 = vld [vmem:[#allocation2 + $0x78] sm:$0xff] }
  0xa1   : > { %397 = vst.msk [vmem:[#allocation2 + $0x98] sm:$0xf] %vm288_vm1, %v386_v1  ;;  %v389_v5 = vsel %vm387_vm6, %v384_v2, %v386_v1  ;;  %v956_v6 = vpack.c.bf16 %v541_v4, %v539_v3  ;;  %v540_v7 = vld [vmem:[#allocation2 + $0x70] sm:$0xff] }
  0xa2   : > { %396 = vst [vmem:[#allocation2 + $0x90] sm:$0xf] %v389_v5  ;;  %v958_v8 = vpack.c.bf16 %v540_v7, %v361_v52 }
  0xa3   : > { %957 = vmatprep.subr.bf16.mxu0 %v956_v6 }
  0xa4   : > { %v409_v9 = vpop.permute.xlu1 %408  ;;  %v407_v10 = vpop.permute.xlu0 %406  ;;  %959 = vmatpush1.bf16.msra.mxu0 %v958_v8  ;;  %v543_v14 = vld [vmem:[#allocation2 + $0x88] sm:$0xff] }
  0xa5   : > { %422 = vst.msk [vmem:[#allocation2 + $0xa8] sm:$0xff] %vm226_vm0, %v409_v9  ;;  %v415_v11 = vsel %vm414_vm7, %v407_v10, %v409_v9 }
  0xa8   : > { %v413_v12 = vpop.permute.xlu1 %412  ;;  %v411_v13 = vpop.permute.xlu0 %410  ;;  %v545_v15 = vld [vmem:[#allocation2 + $0x98] sm:$0xff] }
  0xa9   : > { %424 = vst.msk [vmem:[#allocation2 + $0xb8] sm:$0xf] %vm288_vm1, %v413_v12  ;;  %v416_v16 = vsel %vm414_vm7, %v411_v13, %v413_v12  ;;  %v960_v17 = vpack.c.bf16 %v545_v15, %v543_v14  ;;  %v544_v18 = vld [vmem:[#allocation2 + $0x90] sm:$0xff] }
  0xaa   : > { %423 = vst [vmem:[#allocation2 + $0xb0] sm:$0xf] %v416_v16  ;;  %v962_v19 = vpack.c.bf16 %v544_v18, %v388_v63 }
  0xab   : > { %961 = vmatprep.subr.bf16.mxu0 %v960_v17 }
  0xac   : > { %v436_v20 = vpop.permute.xlu1 %435  ;;  %v434_v21 = vpop.permute.xlu0 %433  ;;  %963 = vmatpush1.bf16.msra.mxu0 %v962_v19  ;;  %v547_v25 = vld [vmem:[#allocation2 + $0xa8] sm:$0xff] }
  0xad   : > { %448 = vst.msk [vmem:[#allocation2 + $0xc8] sm:$0xff] %vm226_vm0, %v436_v20  ;;  %v441_v22 = vsel %vm226_vm0, %v434_v21, %v436_v20 }
  0xb0   : > { %v440_v23 = vpop.permute.xlu1 %439  ;;  %v438_v24 = vpop.permute.xlu0 %437  ;;  %v549_v26 = vld [vmem:[#allocation2 + $0xb8] sm:$0xff] }
  0xb1   : > { %450 = vst.msk [vmem:[#allocation2 + $0xd8] sm:$0xf] %vm288_vm1, %v440_v23  ;;  %v442_v27 = vsel %vm226_vm0, %v438_v24, %v440_v23  ;;  %v964_v28 = vpack.c.bf16 %v549_v26, %v547_v25  ;;  %v548_v30 = vld [vmem:[#allocation2 + $0xb0] sm:$0xff] }
  0xb2   : > { %449 = vst [vmem:[#allocation2 + $0xd0] sm:$0xf] %v442_v27  ;;  %v966_v31 = vpack.c.bf16 %v548_v30, %v415_v11 }
  0xb3   : > { %965 = vmatprep.subr.bf16.mxu0 %v964_v28 }
  0xb4   : > { %v468_v32 = vpop.permute.xlu1 %467  ;;  %v466_v33 = vpop.permute.xlu0 %465  ;;  %967 = vmatpush1.bf16.msra.mxu0 %v966_v31  ;;  %v551_v37 = vld [vmem:[#allocation2 + $0xc8] sm:$0xff] }
  0xb5   : > { %v477_v34 = vsel %vm475_vm8, %v466_v33, %v468_v32 }
  0xb6   : > { %485 = vst.msk [vmem:[#allocation2 + $0xe8] sm:$0xff] %vm226_vm0, %v477_v34 }
  0xb8   : > { %v474_v35 = vpop.permute.xlu1 %473  ;;  %v472_v36 = vpop.permute.xlu0 %471  ;;  %v553_v38 = vld [vmem:[#allocation2 + $0xd8] sm:$0xff] }
  0xb9   : > { %v479_v39 = vsel %vm475_vm8, %v472_v36, %v474_v35  ;;  %v968_v40 = vpack.c.bf16 %v553_v38, %v551_v37  ;;  %v552_v41 = vld [vmem:[#allocation2 + $0xd0] sm:$0xff] }
  0xba   : > { %487 = vst.msk [vmem:[#allocation2 + $0xf8] sm:$0xf] %vm288_vm1, %v479_v39  ;;  %v970_v42 = vpack.c.bf16 %v552_v41, %v441_v22 }
  0xbb   : > { %969 = vmatprep.subr.bf16.mxu0 %v968_v40 }
  0xbc   : > { %v470_v43 = vpop.permute.xlu1 %469  ;;  %v464_v44 = vpop.permute.xlu0 %463  ;;  %971 = vmatpush1.bf16.msra.mxu0 %v970_v42 }
  0xbd   : > { %v478_v45 = vsel %vm475_vm8, %v470_v43, %v472_v36  ;;  %v476_v46 = vsel %vm475_vm8, %v464_v44, %v466_v33  ;;  %v555_v50 = vld [vmem:[#allocation2 + $0xe8] sm:$0xff] }
  0xbe   : > { %486 = vst [vmem:[#allocation2 + $0xf0] sm:$0xf] %v478_v45 }
  0xc0   : > { %v505_v47 = vpop.permute.xlu1 %504  ;;  %v503_v48 = vpop.permute.xlu0 %502 }
  0xc1   : > { %v514_v49 = vsel %vm512_vm9, %v503_v48, %v505_v47  ;;  %v557_v51 = vld [vmem:[#allocation2 + $0xf8] sm:$0xff] }
  0xc2   : > { %522 = vst.msk [vmem:[#allocation2 + $0x108] sm:$0xff] %vm226_vm0, %v514_v49  ;;  %v972_v52 = vpack.c.bf16 %v557_v51, %v555_v50 }
  0xc4   : > { %v511_v53 = vpop.permute.xlu1 %510  ;;  %v509_v54 = vpop.permute.xlu0 %508  ;;  %973 = vmatprep.subr.bf16.mxu0 %v972_v52 }
  0xc5   : > { %v516_v55 = vsel %vm512_vm9, %v509_v54, %v511_v53  ;;  %v556_v56 = vld [vmem:[#allocation2 + $0xf0] sm:$0xff] }
  0xc6   : > { %524 = vst.msk [vmem:[#allocation2 + $0x118] sm:$0xf] %vm288_vm1, %v516_v55  ;;  %v974_v57 = vpack.c.bf16 %v556_v56, %v476_v46  ;;  %vm658_vm1 = vcmask 847616  }
  0xc8   : > { %v507_v58 = vpop.permute.xlu1 %506  ;;  %v501_v59 = vpop.permute.xlu0 %500  ;;  %975 = vmatpush1.bf16.msra.mxu0 %v974_v57 }
  0xc9   : > { %v515_v60 = vsel %vm512_vm9, %v507_v58, %v509_v54  ;;  %v513_v61 = vsel %vm512_vm9, %v501_v59, %v503_v48  ;;  %v559_v62 = vld [vmem:[#allocation2 + $0x108] sm:$0xff] }
  0xca   : > { %523 = vst [vmem:[#allocation2 + $0x110] sm:$0xf] %v515_v60 }
  0xcd   : > { %v561_v63 = vld [vmem:[#allocation2 + $0x118] sm:$0xff] }
  0xce   : > { %v976_v1 = vpack.c.bf16 %v561_v63, %v559_v62 }
  0xd0   : > { %977 = vmatprep.subr.bf16.mxu0 %v976_v1 }
  0xd1   : > { %v560_v2 = vld [vmem:[#allocation2 + $0x110] sm:$0xff] }
  0xd2   : > { %v978_v3 = vpack.c.bf16 %v560_v2, %v513_v61  ;;  %v763_v2 = vld [vmem:[%s1338_s3] sm:$0xf] }
  0xd4   : > { %979 = vmatpush1.bf16.msra.mxu0 %v978_v3 }
  0xd7   : > { %638 = vmatmul.mubr.f32.vlgmr.msra.gmra.mrb[0].mxu0 %v1230_v29 }
  0xd9   : > { %v566_v29 = vpop.permute.xlu0 %565 }
 0x1aa   : > { %v639_v4 = vpop.f32.mrb[0].mxu0 }
 0x1ab   : > { %v640_v5 = vadd.f32 %v639_v4, %v566_v29  ;;  %v641_v6 = vpop.f32.mrb[1].mxu0 }
 0x1ac   : > { %v642_v7 = vadd.f32 %v641_v6, %v566_v29 }
 0x1ad   : > { %vm644_vm11 = vcmp.gt.f32.partialorder %v640_v5, 0.0  ;;  %v646_v8 = vmul.f32 0.01, %v640_v5 }
 0x1ae   : > { %vm645_vm14 = vcmp.gt.f32.partialorder %v642_v7, 0.0  ;;  %v647_v9 = vmul.f32 0.01, %v642_v7 }
 0x1af   : > { %v648_v10 = vsel %vm644_vm11, %v640_v5, %v646_v8 }
 0x1b0   : > { %v649_v11 = vsel %vm645_vm14, %v642_v7, %v647_v9 }
 0x1b1   : > { %v652_v12 = vcombine.low %v648_v10, %v649_v11 }
 0x1b3   : > { %657 = vst.msk [vmem:[#allocation3] sm:$0xff] %vm656_vm15, %v652_v12 }
 0x1b4   : > { %659 = vst.msk [vmem:[#allocation3 + $0x4] sm:$0xf] %vm658_vm1, %v1026_v0  ;;  %v782_v0 = vld [vmem:[%s1339_s4] sm:$0xf] }
 0x1bb   : > { %v679_v13 = vld [vmem:[#allocation3] sm:$0xff] }
 0x1bc   : > { %682 = vrot.lane.b32.xlu0 %v679_v13, %s1028_s26  ;;  %v681_v14 = vcombine.high %v679_v13, %v679_v13  ;;  %670 = vrot.lane.b32.xlu1 %v679_v13, %s1027_s25  ;;  %664 = vst [vmem:[#allocation4] sm:$0xf] %v679_v13 }
 0x1be   : > { %666 = vst.msk [vmem:[#allocation4 + $0x8] sm:$0xf] %vm665_vm2, %v681_v14 }
 0x1c0   : > { %694 = vrot.lane.b32.xlu0 %v679_v13, %s1029_s27  ;;  %672 = vrot.lane.b32.xlu1 %v681_v14, %s1027_s25 }
 0x1c3   : > { %v764_v28 = vld [vmem:[#allocation4] sm:$0xff] }
 0x1c4   : > { %706 = vrot.lane.b32.xlu0 %v679_v13, %s1030_s28  ;;  %684 = vrot.lane.b32.xlu1 %v681_v14, %s1028_s26 }
 0x1c5   : > { %v765_v24 = vld [vmem:[#allocation4 + $0x8] sm:$0xff] }
 0x1c8   : > { %718 = vrot.lane.b32.xlu0 %v679_v13, %s1031_s29  ;;  %696 = vrot.lane.b32.xlu1 %v681_v14, %s1029_s27 }
 0x1cc   : > { %730 = vrot.lane.b32.xlu0 %v679_v13, %s1032_s30  ;;  %708 = vrot.lane.b32.xlu1 %v681_v14, %s1030_s28 }
 0x1d0   : > { %742 = vrot.lane.b32.xlu0 %v679_v13, %s1033_s6  ;;  %720 = vrot.lane.b32.xlu1 %v681_v14, %s1031_s29 }
 0x1d4   : > { %754 = vrot.lane.b32.xlu0 %v679_v13, %s1034_s7  ;;  %732 = vrot.lane.b32.xlu1 %v681_v14, %s1032_s30 }
 0x1d8   : > { %785 = vperm.xlu0 %1015, %v782_v0   ;;  %744 = vrot.lane.b32.xlu1 %v681_v14, %s1033_s6 }
 0x1dc   : > { %756 = vrot.lane.b32.xlu1 %v681_v14, %s1034_s7 }
 0x22e   : > { %v683_v15 = vpop.permute.xlu0 %682  ;;  %v671_v16 = vpop.permute.xlu1 %670 }
 0x232   : > { %v695_v17 = vpop.permute.xlu0 %694  ;;  %v673_v18 = vpop.permute.xlu1 %672 }
 0x233   : > { %v674_v19 = vsel %vm306_vm3, %v671_v16, %v673_v18  ;;  %678 = vst.msk [vmem:[#allocation4 + $0x18] sm:$0xf] %vm665_vm2, %v673_v18  ;;  %vm873_vm3 = vcmask 523268  }
 0x234   : > { %677 = vst [vmem:[#allocation4 + $0x10] sm:$0xf] %v674_v19 }
 0x236   : > { %v707_v20 = vpop.permute.xlu0 %706  ;;  %v685_v21 = vpop.permute.xlu1 %684 }
 0x237   : > { %v686_v22 = vsel %vm333_vm4, %v683_v15, %v685_v21  ;;  %690 = vst.msk [vmem:[#allocation4 + $0x28] sm:$0xf] %vm665_vm2, %v685_v21 }
 0x238   : > { %689 = vst [vmem:[#allocation4 + $0x20] sm:$0xf] %v686_v22 }
 0x23a   : > { %v697_v23 = vpop.permute.xlu1 %696  ;;  %v767_v25 = vld [vmem:[#allocation4 + $0x18] sm:$0xff]  ;;  %v719_v31 = vpop.permute.xlu0 %718 }
 0x23b   : > { %v698_v26 = vsel %vm360_vm5, %v695_v17, %v697_v23  ;;  %702 = vst.msk [vmem:[#allocation4 + $0x38] sm:$0xf] %vm665_vm2, %v697_v23  ;;  %v980_v27 = vpack.c.bf16 %v767_v25, %v765_v24  ;;  %v766_v30 = vld [vmem:[#allocation4 + $0x10] sm:$0xff] }
 0x23c   : > { %701 = vst [vmem:[#allocation4 + $0x30] sm:$0xf] %v698_v26  ;;  %v982_v32 = vpack.c.bf16 %v766_v30, %v764_v28 }
 0x23d   : > { %981 = vmatprep.subr.bf16.mxu1 %v980_v27 }
 0x23e   : > { %v709_v33 = vpop.permute.xlu1 %708  ;;  %983 = vmatpush1.bf16.msra.mxu1 %v982_v32  ;;  %v731_v35 = vpop.permute.xlu0 %730  ;;  %v769_v37 = vld [vmem:[#allocation4 + $0x28] sm:$0xff] }
 0x23f   : > { %v710_v34 = vsel %vm387_vm6, %v707_v20, %v709_v33  ;;  %714 = vst.msk [vmem:[#allocation4 + $0x48] sm:$0xf] %vm665_vm2, %v709_v33  ;;  %v768_v41 = vld [vmem:[#allocation4 + $0x20] sm:$0xff]  ;;  %vm874_vm6 = vmor %vm873_vm3, %vm654_vm12 }
 0x240   : > { %713 = vst [vmem:[#allocation4 + $0x40] sm:$0xf] %v710_v34 }
 0x242   : > { %v721_v36 = vpop.permute.xlu1 %720  ;;  %v771_v38 = vld [vmem:[#allocation4 + $0x38] sm:$0xff]  ;;  %v743_v46 = vpop.permute.xlu0 %742 }
 0x243   : > { %v722_v39 = vsel %vm414_vm7, %v719_v31, %v721_v36  ;;  %726 = vst.msk [vmem:[#allocation4 + $0x58] sm:$0xf] %vm665_vm2, %v721_v36  ;;  %v984_v40 = vpack.c.bf16 %v771_v38, %v769_v37  ;;  %v770_v42 = vld [vmem:[#allocation4 + $0x30] sm:$0xff] }
 0x244   : > { %725 = vst [vmem:[#allocation4 + $0x50] sm:$0xf] %v722_v39  ;;  %v986_v43 = vpack.c.bf16 %v770_v42, %v768_v41 }
 0x245   : > { %985 = vmatprep.subr.bf16.mxu1 %v984_v40 }
 0x246   : > { %v733_v44 = vpop.permute.xlu1 %732  ;;  %987 = vmatpush1.bf16.msra.mxu1 %v986_v43  ;;  %v773_v48 = vld [vmem:[#allocation4 + $0x48] sm:$0xff]  ;;  %v755_v55 = vpop.permute.xlu0 %754 }
 0x247   : > { %v734_v45 = vsel %vm226_vm0, %v731_v35, %v733_v44  ;;  %738 = vst.msk [vmem:[#allocation4 + $0x68] sm:$0xf] %vm665_vm2, %v733_v44  ;;  %v772_v52 = vld [vmem:[#allocation4 + $0x40] sm:$0xff]  ;;  %vm788_vm0 = vcmask 588800  }
 0x248   : > { %737 = vst [vmem:[#allocation4 + $0x60] sm:$0xf] %v734_v45 }
 0x24a   : > { %v745_v47 = vpop.permute.xlu1 %744  ;;  %v775_v49 = vld [vmem:[#allocation4 + $0x58] sm:$0xff] }
 0x24b   : > { %v746_v50 = vsel %vm475_vm8, %v743_v46, %v745_v47  ;;  %750 = vst.msk [vmem:[#allocation4 + $0x78] sm:$0xf] %vm665_vm2, %v745_v47  ;;  %v988_v51 = vpack.c.bf16 %v775_v49, %v773_v48  ;;  %v774_v53 = vld [vmem:[#allocation4 + $0x50] sm:$0xff] }
 0x24c   : > { %749 = vst [vmem:[#allocation4 + $0x70] sm:$0xf] %v746_v50  ;;  %v990_v54 = vpack.c.bf16 %v774_v53, %v772_v52 }
 0x24d   : > { %989 = vmatprep.subr.bf16.mxu1 %v988_v51 }
 0x24e   : > { %v757_v56 = vpop.permute.xlu1 %756  ;;  %991 = vmatpush1.bf16.msra.mxu1 %v990_v54  ;;  %v777_v58 = vld [vmem:[#allocation4 + $0x68] sm:$0xff] }
 0x24f   : > { %v758_v57 = vsel %vm512_vm9, %v755_v55, %v757_v56  ;;  %762 = vst.msk [vmem:[#allocation4 + $0x88] sm:$0xf] %vm665_vm2, %v757_v56  ;;  %v776_v61 = vld [vmem:[#allocation4 + $0x60] sm:$0xff] }
 0x250   : > { %761 = vst [vmem:[#allocation4 + $0x80] sm:$0xf] %v758_v57 }
 0x252   : > { %v779_v59 = vld [vmem:[#allocation4 + $0x78] sm:$0xff] }
 0x253   : > { %v992_v60 = vpack.c.bf16 %v779_v59, %v777_v58  ;;  %v778_v62 = vld [vmem:[#allocation4 + $0x70] sm:$0xff] }
 0x254   : > { %v994_v63 = vpack.c.bf16 %v778_v62, %v776_v61 }
 0x255   : > { %993 = vmatprep.subr.bf16.mxu1 %v992_v60 }
 0x256   : > { %995 = vmatpush1.bf16.msra.mxu1 %v994_v63  ;;  %v781_v1 = vld [vmem:[#allocation4 + $0x88] sm:$0xff] }
 0x257   : > { %808 = vmatprep.subr.mxu1 %v781_v1  ;;  %v780_v3 = vld [vmem:[#allocation4 + $0x80] sm:$0xff]  ;;  %v786_v29 = vpop.permute.xlu0 %785 }
 0x25a   : > { %809 = vmatpush1.msra.mxu1 %v780_v3 }
 0x25b   : > { %940 = vmatmul.mubr.msk.f32.vlgmr.msra.gmra.mrb[0].mxu1 %vm788_vm0, %v763_v2 }
 0x32e   : > { %v858_v4 = vpop.f32.mrb[0].mxu1 }
 0x32f   : > { %v859_v5 = vadd.f32 %v858_v4, %v786_v29  ;;  %v860_v6 = vpop.f32.mrb[1].mxu1 }
 0x330   : > { %v861_v7 = vadd.f32 %v860_v6, %v786_v29 }
 0x331   : > { %vm863_vm4 = vcmp.gt.f32.partialorder %v859_v5, 0.0  ;;  %v865_v8 = vmul.f32 0.01, %v859_v5 }
 0x332   : > { %vm864_vm5 = vcmp.gt.f32.partialorder %v861_v7, 0.0  ;;  %v866_v9 = vmul.f32 0.01, %v861_v7 }
 0x333   : > { %v867_v10 = vsel %vm863_vm4, %v859_v5, %v865_v8 }
 0x334   : > { %v868_v11 = vsel %vm864_vm5, %v861_v7, %v866_v9 }
 0x335   : > { %v871_v12 = vcombine.low %v867_v10, %v868_v11 }
 0x337   : > { %875 = vst.msk [vmem:[%s224_s21] sm:$0xff] %vm874_vm6, %v871_v12 }
 0x338 PF: > { %s15_s18 = sadd.s32 1, %s1024_s18  }
 0x339   : > { %p12_p4 = scmp.ge.s32.totalorder %s15_s18, 4  }
 0x33b   :  { %14 = sbr.rel (!%p12_p4) target bundleno = 1 (0x1), region = 70 }

</bundles_post_ra>
